<compile_context>
chip_gen: v6e
topology: v6e:2x2x1
jax: 0.10.0
libtpu: 0.0.40
codegen_flags: <defaults>
</compile_context>

<pallas_src>
import jax
import jax.numpy as jnp
from jax.experimental import pallas as pl
from jax.experimental.pallas import tpu as pltpu

LN_EPS = 1e-5  # nn.LayerNorm default


def _make_kernel(mm_dtype, use_vpu_mac):
    """Builds the fused kernel. mm_dtype: MXU operand dtype (f32 or bf16).
    use_vpu_mac: do the tiny-K (market_dim) contraction on the VPU."""

    def kernel(xt_ref, g_ref, b_ref, m1t_ref, m2t_ref, fcw_ref, fcb_ref, o_ref):
        xt = xt_ref[...].astype(jnp.float32)               # (D, S) = x^T

        # ---- LayerNorm over the whole (D, S) slab, two-pass statistics ------
        inv_n = 1.0 / (xt.shape[0] * xt.shape[1])
        mean = jnp.sum(xt) * inv_n
        xc = xt - mean
        var = jnp.sum(xc * xc) * inv_n                      # two-pass: no E[x^2]-E[x]^2
        h = xc * jax.lax.rsqrt(var + LN_EPS)
        h = h * g_ref[...].astype(jnp.float32) + b_ref[...].astype(jnp.float32)

        # ---- u' = h' @ M1^T : (D, S) @ (S, M) -> (D, M)  (MXU, f32 acc) ------
        u = jnp.dot(h.astype(mm_dtype), m1t_ref[...],
                    preferred_element_type=jnp.float32)
        u = u * jnp.clip(u + 3.0, 0.0, 6.0) * (1.0 / 6.0)   # Hardswish (f32 VPU)

        # ---- v' = u' @ M2^T : (D, M) @ (M, S) -> (D, S), contraction dim = M -
        if use_vpu_mac:
            # Tiny K: unrolled VPU broadcast-MAC instead of a ~6%-utilized MXU op.
            m2t = m2t_ref[...].astype(jnp.float32)          # (M, S)
            M = m2t.shape[0]
            v = u[:, 0:1] * m2t[0:1, :]
            for m in range(1, M):
                v = v + u[:, m:m + 1] * m2t[m:m + 1, :]
        else:
            v = jnp.dot(u.astype(mm_dtype), m2t_ref[...],
                        preferred_element_type=jnp.float32)

        # ---- fused residual + concat + Linear(2D, 1) -------------------------
        #   fc([x | x+v]) = x . (w_x + w_out) + v . w_out + b
        wc = fcw_ref[:, 0:1]                                # (D, 1): pre-folded w_x + w_out
        wo = fcw_ref[:, 1:2]                                # (D, 1): w_out
        contrib = xt * wc + v * wo                          # (D, S) f32
        pred = jnp.sum(contrib, axis=0, keepdims=True) + fcb_ref[0, 0]   # (1, S)
        o_ref[...] = pred.astype(o_ref.dtype)               # lane-dense store

    return kernel


def _vmem_limit_bytes(operand_bytes, slab_f32_bytes):
    """Scoped-VMEM budget: full-array operand blocks + in-kernel temporaries
    (h / v / contrib ~= 3 f32 slabs) + ~30% headroom for Mosaic scratch.
    Returns None (keep compiler default) when the footprint is tiny."""
    want = int((operand_bytes + 3 * slab_f32_bytes) * 1.3) + (1 << 20)
    if want <= 24 * 1024 * 1024:
        return None
    try:
        cap = pltpu.get_tpu_info().vmem_capacity_bytes
    except Exception:
        cap = 64 * 1024 * 1024                  # conservative: v7x per-TensorCore
    # TODO(synk): above ~45% of capacity, switch to the row-tiled / streamed path.
    return min(want, int(cap * 0.45))


def stock_mixing(x, gamma, beta, m1, m2, fc_w, fc_b, *, use_bf16_mm=False):
    """x: (S, D). gamma/beta: (S, D). m1: (M, S). m2: (S, M).
       fc_w: (1, 2*D) (PyTorch nn.Linear layout). fc_b: (1,). Returns (S, 1).
       use_bf16_mm: opt-in bf16 MXU operands for large S (rounds h before a
       contraction over S -- keep False unless the accuracy budget allows)."""
    S, D = x.shape
    M = m1.shape[0]
    assert m1.shape == (M, S) and m2.shape == (S, M)
    assert fc_w.shape == (1, 2 * D) and fc_b.shape == (1,)

    f32 = jnp.float32
    mm_dtype = jnp.bfloat16 if use_bf16_mm else f32
    use_vpu_mac = M <= 16                        # tiny-K contraction -> VPU MAC
    # gamma/beta as bf16 only when halving their DMA actually matters (>= 1 MiB each).
    ln_dtype = jnp.bfloat16 if (S * D * 4 >= (1 << 20)) else f32

    # ---- wrapper-side layout plumbing: stocks (S) onto the lane axis ---------
    xt = x.T                                                   # (D, S)
    gt = gamma.T.astype(ln_dtype)                              # (D, S)
    bt = beta.T.astype(ln_dtype)                               # (D, S)
    m1t = m1.T.astype(mm_dtype)                                # (S, M)
    m2t = m2.T.astype(f32 if use_vpu_mac else mm_dtype)        # (M, S)
    w_x = fc_w[0, :D].astype(f32)
    w_o = fc_w[0, D:].astype(f32)
    fcw = jnp.stack([w_x + w_o, w_o], axis=1)                  # (D, 2) pre-folded
    fcb = fc_b.reshape(1, 1).astype(f32)                       # scalar -> SMEM

    itemsize = lambda dt: jnp.dtype(dt).itemsize
    operand_bytes = (S * D * itemsize(x.dtype)                 # x^T
                     + 2 * S * D * itemsize(ln_dtype)          # gamma^T, beta^T
                     + S * M * itemsize(m1t.dtype)             # M1^T
                     + M * S * itemsize(m2t.dtype)             # M2^T
                     + D * 2 * 4                               # packed fc weights
                     + S * itemsize(x.dtype))                  # output (1, S)
    vmem_limit = _vmem_limit_bytes(operand_bytes, S * D * 4)

    vmem = pltpu.MemorySpace.VMEM
    smem = pltpu.MemorySpace.SMEM
    out = pl.pallas_call(
        _make_kernel(mm_dtype, use_vpu_mac),
        out_shape=jax.ShapeDtypeStruct((1, S), x.dtype),
        # No grid: one invocation, every operand is a full-array block read once.
        in_specs=[
            pl.BlockSpec(memory_space=vmem),   # x^T
            pl.BlockSpec(memory_space=vmem),   # gamma^T
            pl.BlockSpec(memory_space=vmem),   # beta^T
            pl.BlockSpec(memory_space=vmem),   # M1^T
            pl.BlockSpec(memory_space=vmem),   # M2^T
            pl.BlockSpec(memory_space=vmem),   # packed fc weights (D, 2)
            pl.BlockSpec(memory_space=smem),   # fc bias scalar (1, 1)
        ],
        out_specs=pl.BlockSpec(memory_space=vmem),
        compiler_params=pltpu.CompilerParams(vmem_limit_bytes=vmem_limit),
    )(xt, gt, bt, m1t, m2t, fcw, fcb)
    return out.reshape(S, 1)                   # (1, S) row-major == (S, 1): free reshape


def _reference(x, gamma, beta, m1, m2, fc_w, fc_b):
    """Pure-JAX reference matching the PyTorch forward semantics (full f32)."""
    mean = jnp.mean(x)
    var = jnp.mean((x - mean) ** 2)
    h = (x - mean) / jnp.sqrt(var + LN_EPS) * gamma + beta
    u = m1 @ h
    u = u * jnp.clip(u + 3.0, 0.0, 6.0) / 6.0          # Hardswish
    v = m2 @ u
    out = x + v
    cat = jnp.concatenate([x, out], axis=1)            # (S, 2D)
    return cat @ fc_w.T + fc_b[None, :]                # (S, 1)


if __name__ == "__main__":
    market_dim, stock_num, mix_dim = 8, 16, 32
    key = jax.random.PRNGKey(0)
    kx, k1, k2, kw, kb = jax.random.split(key, 5)

    # Inputs / parameters mirroring StockMixing.__init__ defaults.
    x = jax.random.normal(kx, (stock_num, mix_dim), jnp.float32)
    gamma = jnp.ones((stock_num, mix_dim), jnp.float32)    # nn.LayerNorm weight
    beta = jnp.zeros((stock_num, mix_dim), jnp.float32)    # nn.LayerNorm bias
    m1 = jax.random.normal(k1, (market_dim, stock_num), jnp.float32)
    m2 = jax.random.normal(k2, (stock_num, market_dim), jnp.float32)
    bound = (2 * mix_dim) ** -0.5                          # nn.Linear default init
    fc_w = jax.random.uniform(kw, (1, 2 * mix_dim), jnp.float32, -bound, bound)
    fc_b = jax.random.uniform(kb, (1,), jnp.float32, -bound, bound)

    out = jax.block_until_ready(stock_mixing(x, gamma, beta, m1, m2, fc_w, fc_b))
    assert out.shape == (stock_num, 1)

    ref = _reference(x, gamma, beta, m1, m2, fc_w, fc_b)
    max_err = jnp.max(jnp.abs(out - ref))
    assert jnp.allclose(out, ref, atol=2e-3, rtol=2e-3), f"max abs err = {max_err}"

    print("KERNEL_OK")
</pallas_src>

<mosaic_0001>
module attributes {stable_mosaic.version = 11 : i64} {
  func.func @kernel(%arg0: memref<32x16xf32, #tpu.memory_space<vmem>>, %arg1: memref<32x16xf32, #tpu.memory_space<vmem>>, %arg2: memref<32x16xf32, #tpu.memory_space<vmem>>, %arg3: memref<16x8xf32, #tpu.memory_space<vmem>>, %arg4: memref<8x16xf32, #tpu.memory_space<vmem>>, %arg5: memref<32x2xf32, #tpu.memory_space<vmem>>, %arg6: memref<1x1xf32, #tpu.memory_space<smem>>, %arg7: memref<1x16xf32, #tpu.memory_space<vmem>>) attributes {dimension_semantics = [], scalar_prefetch = 0 : i64, scratch_operands = 0 : i64, tpu.core_type = #tpu.core_type<tc>} {
    %c0 = arith.constant 0 : index
    %c0_0 = arith.constant 0 : index
    %0 = vector.load %arg0[%c0, %c0_0] : memref<32x16xf32, #tpu.memory_space<vmem>>, vector<32x16xf32>
    %1 = vector.shape_cast %0 : vector<32x16xf32> to vector<1x32x16xf32>
    %cst = arith.constant dense<0.000000e+00> : vector<1xf32>
    %2 = vector.multi_reduction <add>, %1, %cst [1, 2] : vector<1x32x16xf32> to vector<1xf32>
    %3 = vector.shape_cast %2 : vector<1xf32> to vector<1x1x1xf32>
    %4 = vector.extract %3[0, 0, 0] : f32 from vector<1x1x1xf32>
    %cst_1 = arith.constant 0.001953125 : f32
    %5 = arith.mulf %4, %cst_1 : f32
    %6 = vector.broadcast %5 : f32 to vector<32x16xf32>
    %7 = arith.subf %0, %6 : vector<32x16xf32>
    %8 = arith.mulf %7, %7 : vector<32x16xf32>
    %9 = vector.shape_cast %8 : vector<32x16xf32> to vector<1x32x16xf32>
    %cst_2 = arith.constant dense<0.000000e+00> : vector<1xf32>
    %10 = vector.multi_reduction <add>, %9, %cst_2 [1, 2] : vector<1x32x16xf32> to vector<1xf32>
    %11 = vector.shape_cast %10 : vector<1xf32> to vector<1x1x1xf32>
    %12 = vector.extract %11[0, 0, 0] : f32 from vector<1x1x1xf32>
    %cst_3 = arith.constant 0.001953125 : f32
    %13 = arith.mulf %12, %cst_3 : f32
    %cst_4 = arith.constant 9.99999974E-6 : f32
    %14 = arith.addf %13, %cst_4 : f32
    %15 = math.rsqrt %14 : f32
    %16 = vector.broadcast %15 : f32 to vector<32x16xf32>
    %17 = arith.mulf %7, %16 : vector<32x16xf32>
    %c0_5 = arith.constant 0 : index
    %c0_6 = arith.constant 0 : index
    %18 = vector.load %arg1[%c0_5, %c0_6] : memref<32x16xf32, #tpu.memory_space<vmem>>, vector<32x16xf32>
    %19 = arith.mulf %17, %18 : vector<32x16xf32>
    %c0_7 = arith.constant 0 : index
    %c0_8 = arith.constant 0 : index
    %20 = vector.load %arg2[%c0_7, %c0_8] : memref<32x16xf32, #tpu.memory_space<vmem>>, vector<32x16xf32>
    %21 = arith.addf %19, %20 : vector<32x16xf32>
    %c0_9 = arith.constant 0 : index
    %c0_10 = arith.constant 0 : index
    %22 = vector.load %arg3[%c0_9, %c0_10] : memref<16x8xf32, #tpu.memory_space<vmem>>, vector<16x8xf32>
    %cst_11 = arith.constant dense<0.000000e+00> : vector<32x8xf32>
    %23 = tpu.matmul %21, %22, %cst_11 {dimension_numbers = #tpu.dot_dimension_numbers<[1], [0], [0], [1], [0, 0, 1, 1], [], []>} : vector<32x16xf32>, vector<16x8xf32>, vector<32x8xf32> -> vector<32x8xf32>
    %cst_12 = arith.constant 3.000000e+00 : f32
    %24 = vector.broadcast %cst_12 : f32 to vector<32x8xf32>
    %25 = arith.addf %23, %24 : vector<32x8xf32>
    %cst_13 = arith.constant 0.000000e+00 : f32
    %cst_14 = arith.constant 6.000000e+00 : f32
    %26 = vector.broadcast %cst_13 : f32 to vector<32x8xf32>
    %27 = arith.maximumf %26, %25 : vector<32x8xf32>
    %28 = vector.broadcast %cst_14 : f32 to vector<32x8xf32>
    %29 = arith.minimumf %28, %27 : vector<32x8xf32>
    %30 = arith.mulf %23, %29 : vector<32x8xf32>
    %cst_15 = arith.constant 0.166666672 : f32
    %31 = vector.broadcast %cst_15 : f32 to vector<32x8xf32>
    %32 = arith.mulf %30, %31 : vector<32x8xf32>
    %c0_16 = arith.constant 0 : index
    %c0_17 = arith.constant 0 : index
    %33 = vector.load %arg4[%c0_16, %c0_17] : memref<8x16xf32, #tpu.memory_space<vmem>>, vector<8x16xf32>
    %34 = vector.extract_strided_slice %32 {offsets = [0, 0], sizes = [32, 1], strides = [1, 1]} : vector<32x8xf32> to vector<32x1xf32>
    %35 = vector.extract_strided_slice %33 {offsets = [0, 0], sizes = [1, 16], strides = [1, 1]} : vector<8x16xf32> to vector<1x16xf32>
    %36 = vector.broadcast %34 : vector<32x1xf32> to vector<32x16xf32>
    %37 = vector.broadcast %35 : vector<1x16xf32> to vector<32x16xf32>
    %38 = arith.mulf %36, %37 : vector<32x16xf32>
    %39 = vector.extract_strided_slice %32 {offsets = [0, 1], sizes = [32, 1], strides = [1, 1]} : vector<32x8xf32> to vector<32x1xf32>
    %40 = vector.extract_strided_slice %33 {offsets = [1, 0], sizes = [1, 16], strides = [1, 1]} : vector<8x16xf32> to vector<1x16xf32>
    %41 = vector.broadcast %39 : vector<32x1xf32> to vector<32x16xf32>
    %42 = vector.broadcast %40 : vector<1x16xf32> to vector<32x16xf32>
    %43 = arith.mulf %41, %42 : vector<32x16xf32>
    %44 = arith.addf %38, %43 : vector<32x16xf32>
    %45 = vector.extract_strided_slice %32 {offsets = [0, 2], sizes = [32, 1], strides = [1, 1]} : vector<32x8xf32> to vector<32x1xf32>
    %46 = vector.extract_strided_slice %33 {offsets = [2, 0], sizes = [1, 16], strides = [1, 1]} : vector<8x16xf32> to vector<1x16xf32>
    %47 = vector.broadcast %45 : vector<32x1xf32> to vector<32x16xf32>
    %48 = vector.broadcast %46 : vector<1x16xf32> to vector<32x16xf32>
    %49 = arith.mulf %47, %48 : vector<32x16xf32>
    %50 = arith.addf %44, %49 : vector<32x16xf32>
    %51 = vector.extract_strided_slice %32 {offsets = [0, 3], sizes = [32, 1], strides = [1, 1]} : vector<32x8xf32> to vector<32x1xf32>
    %52 = vector.extract_strided_slice %33 {offsets = [3, 0], sizes = [1, 16], strides = [1, 1]} : vector<8x16xf32> to vector<1x16xf32>
    %53 = vector.broadcast %51 : vector<32x1xf32> to vector<32x16xf32>
    %54 = vector.broadcast %52 : vector<1x16xf32> to vector<32x16xf32>
    %55 = arith.mulf %53, %54 : vector<32x16xf32>
    %56 = arith.addf %50, %55 : vector<32x16xf32>
    %57 = vector.extract_strided_slice %32 {offsets = [0, 4], sizes = [32, 1], strides = [1, 1]} : vector<32x8xf32> to vector<32x1xf32>
    %58 = vector.extract_strided_slice %33 {offsets = [4, 0], sizes = [1, 16], strides = [1, 1]} : vector<8x16xf32> to vector<1x16xf32>
    %59 = vector.broadcast %57 : vector<32x1xf32> to vector<32x16xf32>
    %60 = vector.broadcast %58 : vector<1x16xf32> to vector<32x16xf32>
    %61 = arith.mulf %59, %60 : vector<32x16xf32>
    %62 = arith.addf %56, %61 : vector<32x16xf32>
    %63 = vector.extract_strided_slice %32 {offsets = [0, 5], sizes = [32, 1], strides = [1, 1]} : vector<32x8xf32> to vector<32x1xf32>
    %64 = vector.extract_strided_slice %33 {offsets = [5, 0], sizes = [1, 16], strides = [1, 1]} : vector<8x16xf32> to vector<1x16xf32>
    %65 = vector.broadcast %63 : vector<32x1xf32> to vector<32x16xf32>
    %66 = vector.broadcast %64 : vector<1x16xf32> to vector<32x16xf32>
    %67 = arith.mulf %65, %66 : vector<32x16xf32>
    %68 = arith.addf %62, %67 : vector<32x16xf32>
    %69 = vector.extract_strided_slice %32 {offsets = [0, 6], sizes = [32, 1], strides = [1, 1]} : vector<32x8xf32> to vector<32x1xf32>
    %70 = vector.extract_strided_slice %33 {offsets = [6, 0], sizes = [1, 16], strides = [1, 1]} : vector<8x16xf32> to vector<1x16xf32>
    %71 = vector.broadcast %69 : vector<32x1xf32> to vector<32x16xf32>
    %72 = vector.broadcast %70 : vector<1x16xf32> to vector<32x16xf32>
    %73 = arith.mulf %71, %72 : vector<32x16xf32>
    %74 = arith.addf %68, %73 : vector<32x16xf32>
    %75 = vector.extract_strided_slice %32 {offsets = [0, 7], sizes = [32, 1], strides = [1, 1]} : vector<32x8xf32> to vector<32x1xf32>
    %76 = vector.extract_strided_slice %33 {offsets = [7, 0], sizes = [1, 16], strides = [1, 1]} : vector<8x16xf32> to vector<1x16xf32>
    %77 = vector.broadcast %75 : vector<32x1xf32> to vector<32x16xf32>
    %78 = vector.broadcast %76 : vector<1x16xf32> to vector<32x16xf32>
    %79 = arith.mulf %77, %78 : vector<32x16xf32>
    %80 = arith.addf %74, %79 : vector<32x16xf32>
    %c0_18 = arith.constant 0 : index
    %c0_19 = arith.constant 0 : index
    %81 = vector.load %arg5[%c0_18, %c0_19] : memref<32x2xf32, #tpu.memory_space<vmem>>, vector<32x1xf32>
    %c0_20 = arith.constant 0 : index
    %c1 = arith.constant 1 : index
    %82 = vector.load %arg5[%c0_20, %c1] : memref<32x2xf32, #tpu.memory_space<vmem>>, vector<32x1xf32>
    %83 = vector.broadcast %81 : vector<32x1xf32> to vector<32x16xf32>
    %84 = arith.mulf %0, %83 : vector<32x16xf32>
    %85 = vector.broadcast %82 : vector<32x1xf32> to vector<32x16xf32>
    %86 = arith.mulf %80, %85 : vector<32x16xf32>
    %87 = arith.addf %84, %86 : vector<32x16xf32>
    %cst_21 = arith.constant dense<0.000000e+00> : vector<16xf32>
    %88 = vector.multi_reduction <add>, %87, %cst_21 [0] : vector<32x16xf32> to vector<16xf32>
    %89 = vector.shape_cast %88 : vector<16xf32> to vector<1x16xf32>
    %c0_22 = arith.constant 0 : index
    %c0_23 = arith.constant 0 : index
    %90 = memref.load %arg6[%c0_22, %c0_23] : memref<1x1xf32, #tpu.memory_space<smem>>
    %91 = vector.broadcast %90 : f32 to vector<1x16xf32>
    %92 = arith.addf %89, %91 : vector<1x16xf32>
    %c0_24 = arith.constant 0 : index
    %c0_25 = arith.constant 0 : index
    %93 = vector.load %arg7[%c0_24, %c0_25] : memref<1x16xf32, #tpu.memory_space<vmem>>, vector<1x16xf32>
    tpu.vector_store %arg7[%c0_24, %c0_25], %92 {strides = array<i32>} : memref<1x16xf32, #tpu.memory_space<vmem>>, vector<1x16xf32>,
    return
  }
}

</mosaic_0001>

<bundles_post_ra>
// kernel: tpu_custom_call.1
= control target key start
LH: loop header
LB: loop body
LE: loop exit
PB: predicated region body
PF: predicated region fallthrough
CT: control target
= control target key end

     0   :  { %vm32_vm0 = vcmask 130048   ;;  %s818_s0 = inlined_call_operand.vmem [shape: f32[32,16], index: 0, kind: input, shape index: {}]   ;;  %s819_s1 = inlined_call_operand.vmem [shape: f32[32,16], index: 1, kind: input, shape index: {}]   ;;  %s820_s2 = inlined_call_operand.vmem [shape: f32[32,16], index: 2, kind: input, shape index: {}]   ;;  %s821_s3 = inlined_call_operand.vmem [shape: f32[16,8], index: 3, kind: input, shape index: {}]   ;;  %s822_s4 = inlined_call_operand.vmem [shape: f32[8,16], index: 4, kind: input, shape index: {}]   ;;  %s823_s5 = inlined_call_operand.vmem [shape: f32[32,2], index: 5, kind: input, shape index: {}]   ;;  %s824_s6 = inlined_call_operand.<no memory space> [shape: f32[1,1], index: 6, kind: input, shape index: {}]   ;;  %s825_s7 = inlined_call_operand.hbm [shape: f32[1,16], index: 7, kind: output, shape index: {}]  }
   0x1   :  { %v671_v0 = vld [vmem:[%s818_s0] sm:$0xff]  ;;  %v676_v1 = vld [vmem:[%s818_s0 + $0x8] sm:$0xff]  ;;  %v681_v2 = vld [vmem:[%s818_s0 + $0x10] sm:$0xff] }
   0x2   :  { %v686_v3 = vld [vmem:[%s818_s0 + $0x18] sm:$0xff]  ;;  %v33_v4 = vsel %vm32_vm0, %v671_v0, 0.0  ;;  %v34_v5 = vsel %vm32_vm0, %v676_v1, 0.0  ;;  %v36_v6 = vsel %vm32_vm0, %v681_v2, 0.0 }
   0x3   :  { %13 = vsyncpa [#allocation4], 0  ;;  %v35_v7 = vadd.f32 %v34_v5, %v33_v4  ;;  %v38_v8 = vsel %vm32_vm0, %v686_v3, 0.0  ;;  %v102_v39 = vld [vmem:[%s821_s3 + $0x8] sm:$0xff]  ;;  %v101_v40 = vld [vmem:[%s821_s3] sm:$0xff]  ;;  %v619_v44 = vmov 0  }
   0x4   :  { %539 = vmatprep.subr.mxu0 %v102_v39  ;;  %549 = vmatprep.subr.mxu1 %v102_v39  ;;  %v445_v43 = vld [vmem:[%s823_s5] sm:$0xff]  ;;  %v620_v45 = vmov 1   ;;  %v86_v48 = vld [vmem:[%s819_s1 + $0x8] sm:$0xff]  ;;  %v88_v50 = vld [vmem:[%s819_s1 + $0x18] sm:$0xff]  ;;  %vm513_vm1 = vcmask 122880  }
   0x5   :  { %v37_v9 = vadd.f32 %v36_v6, %v35_v7  ;;  %540 = vmatpush3.msra.mxu0 %v102_v39  ;;  %551 = vmatpush3.msra.mxu1 %v102_v39  ;;  %v85_v51 = vld [vmem:[%s819_s1] sm:$0xff]  ;;  %v87_v52 = vld [vmem:[%s819_s1 + $0x10] sm:$0xff]  ;;  %v94_v59 = vld [vmem:[%s820_s2 + $0x8] sm:$0xff] }
   0x6   :  { %541 = vmatprep.subr.mxu0 %v101_v40  ;;  %550 = vmatprep.subr.mxu1 %v101_v40  ;;  %v93_v57 = vld [vmem:[%s820_s2] sm:$0xff]  ;;  %v95_v58 = vld [vmem:[%s820_s2 + $0x10] sm:$0xff]  ;;  %v96_v60 = vld [vmem:[%s820_s2 + $0x18] sm:$0xff] }
   0x7   :  { %v39_v10 = vadd.f32 %v38_v8, %v37_v9  ;;  %542 = vmatpush3.msra.mxu0 %v101_v40  ;;  %552 = vmatpush3.msra.mxu1 %v101_v40  ;;  %v446_v9 = vld [vmem:[%s823_s5 + $0x8] sm:$0xff]  ;;  %v626_v40 = vmov 6  }
   0x8   :  { %568 = vset.pattern.permute.xlu1 %v619_v44  ;;  %569 = vset.pattern.permute.xlu0 %v619_v44 }
   0x9   :  { %40 = vadd.xlane.f32.xlu0 %v39_v10  ;;  %451 = vperm.xlu1 %568, %v445_v43   ;;  %v750_v10 = vld [vmem:[%s823_s5 + $0x10] sm:$0xff] }
   0xd   :  { %570 = vset.pattern.permute.xlu1 %v620_v45 }
   0xe   :  { %474 = vperm.xlu1 %570, %v445_v43  }
  0x12   :  { %478 = vperm.xlu1 %570, %v446_v9  }
  0x16   :  { %571 = vset.pattern.permute.xlu1 %v619_v44 }
  0x92   :  { %v41_v11 = vpop.xlane.xlu0 %40 }
  0x93   :  { %v42_v12 = vrot.slane %v41_v11, 4 }
  0x95   :  { %v43_v13 = vadd.f32 %v42_v12, %v41_v11  ;;  %v621_v11 = vmov 4  }
  0x97   :  { %v44_v14 = vrot.slane %v43_v13, 2 }
  0x99   :  { %v45_v15 = vadd.f32 %v44_v14, %v43_v13 }
  0x9b   :  { %v46_v16 = vrot.slane %v45_v15, 1 }
  0x9d   :  { %v47_v17 = vadd.f32 %v46_v16, %v45_v15 }
  0x9f   :  { %553 = vpush %v47_v17 }
  0xd0   :  { %s554_s0 = spop %553 }
  0xd1   :  { %s49_s9 = smul.f32 0.001953125, %s554_s0 }
  0xd3   :  { %v50_v18 = vstv %s49_s9 }
  0xd4   :  { %v51_v19 = vsub.f32 %v671_v0, %v50_v18  ;;  %v52_v20 = vsub.f32 %v676_v1, %v50_v18  ;;  %v53_v21 = vsub.f32 %v681_v2, %v50_v18  ;;  %v54_v22 = vsub.f32 %v686_v3, %v50_v18 }
  0xd6   :  { %v55_v23 = vmul.f32 %v51_v19, %v51_v19  ;;  %v56_v24 = vmul.f32 %v52_v20, %v52_v20  ;;  %v57_v25 = vmul.f32 %v53_v21, %v53_v21  ;;  %v58_v26 = vmul.f32 %v54_v22, %v54_v22 }
  0xd8   :  { %v59_v27 = vsel %vm32_vm0, %v55_v23, 0.0  ;;  %v60_v28 = vsel %vm32_vm0, %v56_v24, 0.0  ;;  %v62_v30 = vsel %vm32_vm0, %v57_v25, 0.0  ;;  %v64_v32 = vsel %vm32_vm0, %v58_v26, 0.0 }
  0xd9   :  { %v61_v29 = vadd.f32 %v60_v28, %v59_v27  ;;  %v622_v26 = vmov 5  }
  0xdb   :  { %v63_v31 = vadd.f32 %v62_v30, %v61_v29  ;;  %v623_v30 = vmov 7  }
  0xdd   :  { %v65_v33 = vadd.f32 %v64_v32, %v63_v31 }
  0xdf   :  { %66 = vadd.xlane.f32.xlu0 %v65_v33 }
  0xf5   :  { %456 = vperm.xlu0 %569, %v446_v9  }
  0xf9   :  { %461 = vperm.xlu0 %569, %v750_v10  }
  0xfd   :  { %575 = vset.pattern.permute.xlu0 %v621_v11 }
 0x168   :  { %v67_v34 = vpop.xlane.xlu0 %66 }
 0x169   :  { %v68_v35 = vrot.slane %v67_v34, 4 }
 0x16b   :  { %v69_v36 = vadd.f32 %v68_v35, %v67_v34  ;;  %v624_v35 = vmov 2  }
 0x16d   :  { %v70_v37 = vrot.slane %v69_v36, 2 }
 0x16f   :  { %v71_v38 = vadd.f32 %v70_v37, %v69_v36 }
 0x171   :  { %v72_v41 = vrot.slane %v71_v38, 1 }
 0x173   :  { %v73_v42 = vadd.f32 %v72_v41, %v71_v38  ;;  %v625_v38 = vmov 3   ;;  %v448_v41 = vld [vmem:[%s823_s5 + $0x18] sm:$0xff] }
 0x175   :  { %555 = vpush %v73_v42  ;;  %v766_v42 = vpop.permute.xlu1 %451 }
 0x179   :  { %v770_v43 = vpop.permute.xlu1 %474 }
 0x1a6   :  { %s556_s3 = spop %555 }
 0x1a7   :  { %s75_s16 = smul.f32 0.001953125, %s556_s3 }
 0x1a9   :  { %s76_s17 = sadd.f32 1e-05, %s75_s16  ;;  %s627_s16 = smov [#allocation3]  }
 0x1ab   :  { %v77_v46 = vstv %s76_s17  ;;  %s521_s17 = sshll.u32 %s627_s16, 4  ;;  %s522_s17 = int_to_ptr.vmem [resolvable:$true] %s521_s17 }
 0x1ac   :  { %595 = vrsqrt.f32 %v77_v46  ;;  %v479_v46 = vpop.permute.xlu1 %478  ;;  %s601_s19 = scalar_lea.vmem %s522_s17, 32  ;;  %p602_p1 = scmp.lt.s32.totalorder %s522_s17, %s522_s17 }
 0x1b9   :  { %v596_v47 = vpop.eup %595 }
 0x1ba   :  { %557 = vpush %v596_v47 }
 0x1eb   :  { %s558_s18 = spop %557 }
 0x1ec   :  { %v80_v49 = vstv %s558_s18  ;;  %s597_s18 = scalar_lea.vmem %s522_s17, 16 }
 0x1ed   :  { %v81_v53 = vmul.f32 %v80_v49, %v51_v19  ;;  %v82_v54 = vmul.f32 %v80_v49, %v52_v20  ;;  %v83_v55 = vmul.f32 %v80_v49, %v53_v21  ;;  %v84_v56 = vmul.f32 %v80_v49, %v54_v22  ;;  %p598_p0 = scmp.ne.s32.totalorder %s522_s17, %s597_s18  ;;  %p603_p2 = scmp.lt.s32.totalorder %s601_s19, %s597_s18 }
 0x1ef   :  { %v90_v61 = vmul.f32 %v86_v48, %v82_v54  ;;  %v92_v62 = vmul.f32 %v88_v50, %v84_v56  ;;  %v89_v63 = vmul.f32 %v85_v51, %v81_v53  ;;  %v91_v4 = vmul.f32 %v87_v52, %v83_v55  ;;  %v220_v51 = vld [vmem:[%s822_s4] sm:$0xff]  ;;  %p604_p3 = por %p603_p2, %p602_p1 }
 0x1f1   :  { %v97_v5 = vadd.f32 %v93_v57, %v89_v63  ;;  %v99_v6 = vadd.f32 %v95_v58, %v91_v4  ;;  %v98_v7 = vadd.f32 %v94_v59, %v90_v61  ;;  %v100_v8 = vadd.f32 %v96_v60, %v92_v62  ;;  %v779_v4 = vpop.permute.xlu0 %456  ;;  %p605_p4 = pnand %p604_p3, %p598_p0 }
 0x1f3   :  { %543 = vmatprep.mubr.msk.f32.mxu0 %vm32_vm0, %v97_v5  ;;  %546 = vmatprep.mubr.msk.f32.mxu1 %vm32_vm0, %v99_v6 }
 0x1f4   :  { %544 = vmatmul.mubr.msk.f32.vlgmr.msra.gmra.mxu0 %vm32_vm0, %v98_v7  ;;  %547 = vmatmul.mubr.msk.f32.vlgmr.msra.gmra.mxu1 %vm32_vm0, %v100_v8 }
 0x1f5   :  { %v781_v9 = vpop.permute.xlu0 %461 }
 0x2b4   :  { %v545_v12 = vpop.f32.mrf.mxu0  ;;  %v548_v13 = vpop.f32.mrf.mxu1 }
 0x2b5   :  { %v201_v14 = vadd.f32 3.0, %v545_v12  ;;  %v203_v15 = vadd.f32 3.0, %v548_v13 }
 0x2b6   :  { %v191_v23 = vpop.f32.mrf.mxu1  ;;  %v181_v28 = vpop.f32.mrf.mxu0 }
 0x2b7   :  { %v205_v16 = vmax.f32 %v201_v14, 0.0  ;;  %v207_v17 = vmax.f32 %v203_v15, 0.0  ;;  %v202_v24 = vadd.f32 3.0, %v191_v23  ;;  %v200_v31 = vadd.f32 3.0, %v181_v28 }
 0x2b9   :  { %v209_v18 = vmin.f32 %v205_v16, 6.0  ;;  %v211_v19 = vmin.f32 %v207_v17, 6.0  ;;  %v206_v27 = vmax.f32 %v202_v24, 0.0  ;;  %v204_v33 = vmax.f32 %v200_v31, 0.0 }
 0x2bb   :  { %v213_v20 = vmul.f32 %v545_v12, %v209_v18  ;;  %v215_v22 = vmul.f32 %v548_v13, %v211_v19  ;;  %v210_v29 = vmin.f32 %v206_v27, 6.0  ;;  %v208_v36 = vmin.f32 %v204_v33, 6.0 }
 0x2bd   :  { %v217_v21 = vmul.f32 0.16666667, %v213_v20  ;;  %v219_v25 = vmul.f32 0.16666667, %v215_v22  ;;  %v214_v32 = vmul.f32 %v210_v29, %v191_v23  ;;  %v212_v37 = vmul.f32 %v208_v36, %v181_v28 }
 0x2bf   :  { %338 = vperm.xlu0 %575, %v217_v21   ;;  %228 = vperm.xlu1 %571, %v217_v21   ;;  %v218_v34 = vmul.f32 0.16666667, %v214_v32  ;;  %v216_v39 = vmul.f32 0.16666667, %v212_v37 }
 0x2c3   :  { %576 = vset.pattern.permute.xlu0 %v622_v26  ;;  %238 = vperm.xlu1 %571, %v219_v25  }
 0x2c4   :  { %366 = vperm.xlu0 %576, %v217_v21  }
 0x2c7   :  { %572 = vset.pattern.permute.xlu1 %v620_v45 }
 0x2c8   :  { %580 = vset.pattern.permute.xlu0 %v623_v30  ;;  %254 = vperm.xlu1 %572, %v217_v21  }
 0x2c9   :  { %422 = vperm.xlu0 %580, %v217_v21  }
 0x2cc   :  { %262 = vperm.xlu1 %572, %v219_v25  }
 0x2cd   :  { %430 = vperm.xlu0 %580, %v219_v25  }
 0x2d0   :  { %573 = vset.pattern.permute.xlu1 %v624_v35 }
 0x2d1   :  { %583 = vset.pattern.permute.xlu0 %v619_v44  ;;  %282 = vperm.xlu1 %573, %v217_v21  }
 0x2d2   :  { %233 = vperm.xlu0 %583, %v218_v34  }
 0x2d5   :  { %290 = vperm.xlu1 %573, %v219_v25  }
 0x2d6   :  { %587 = vset.pattern.permute.xlu0 %v625_v38 }
 0x2d7   :  { %314 = vperm.xlu0 %587, %v218_v34  }
 0x2d9   :  { %574 = vset.pattern.permute.xlu1 %v625_v38 }
 0x2da   :  { %310 = vperm.xlu1 %574, %v217_v21  }
 0x2db   :  { %590 = vset.pattern.permute.xlu0 %v626_v40 }
 0x2dc   :  { %390 = vperm.xlu0 %590, %v216_v39  }
 0x2de   :  { %318 = vperm.xlu1 %574, %v219_v25  }
 0x2e0   :  { %398 = vperm.xlu0 %590, %v218_v34  }
 0x2e2   :  { %577 = vset.pattern.permute.xlu1 %v621_v11 }
 0x2e3   :  { %346 = vperm.xlu1 %577, %v219_v25  }
 0x2e4   :  { %593 = vset.pattern.permute.xlu0 %v619_v44 }
 0x2e5   :  { %466 = vperm.xlu0 %593, %v448_v41  }
 0x2e7   :  { %578 = vset.pattern.permute.xlu1 %v626_v40 }
 0x2e8   :  { %394 = vperm.xlu1 %578, %v217_v21  }
 0x2e9   :  { %594 = vset.pattern.permute.xlu0 %v620_v45 }
 0x2ec   :  { %579 = vset.pattern.permute.xlu1 %v622_v26 }
 0x2ed   :  { %374 = vperm.xlu1 %579, %v219_v25  }
 0x2f1   :  { %581 = vset.pattern.permute.xlu1 %v626_v40 }
 0x2f2   :  { %402 = vperm.xlu1 %581, %v219_v25  }
 0x2f6   :  { %582 = vset.pattern.permute.xlu1 %v619_v44  ;;  %v241_v44 = vlaneseq }
 0x2f7   :  { %223 = vperm.xlu1 %582, %v216_v39  }
 0x2f8   :  { %v242_v47 = vshrl.u32 %v241_v44, 7 }
 0x2fa   :  { %v243_v49 = vsub.s32 0, %v242_v47  ;;  %v267_v50 = vsub.s32 1, %v242_v47  ;;  %v295_v57 = vsub.s32 2, %v242_v47  ;;  %v351_v14 = vsub.s32 4, %v242_v47 }
 0x2fb   :  { %584 = vset.pattern.permute.xlu1 %v620_v45  ;;  %v379_v20 = vsub.s32 5, %v242_v47  ;;  %v435_v25 = vsub.s32 7, %v242_v47 }
 0x2fc   :  { %250 = vperm.xlu1 %584, %v216_v39   ;;  %v775_v53 = vrot.slane %v220_v51, %v243_v49  ;;  %v268_v54 = vrot.slane %v220_v51, %v267_v50  ;;  %v296_v62 = vrot.slane %v220_v51, %v295_v57  ;;  %v352_v19 = vrot.slane %v220_v51, %v351_v14 }
 0x2fd   :  { %v785_v24 = vrot.slane %v220_v51, %v379_v20 }
 0x300   :  { %258 = vperm.xlu1 %584, %v218_v34  }
 0x304   :  { %585 = vset.pattern.permute.xlu1 %v624_v35 }
 0x305   :  { %278 = vperm.xlu1 %585, %v216_v39  }
 0x309   :  { %286 = vperm.xlu1 %585, %v218_v34  }
 0x30d   :  { %586 = vset.pattern.permute.xlu1 %v625_v38 }
 0x30e   :  { %306 = vperm.xlu1 %586, %v216_v39  }
 0x312   :  { %588 = vset.pattern.permute.xlu1 %v621_v11  ;;  %v323_v11 = vsub.s32 3, %v242_v47 }
 0x313   :  { %334 = vperm.xlu1 %588, %v216_v39  }
 0x314   :  { %v324_v15 = vrot.slane %v220_v51, %v323_v11 }
 0x317   :  { %342 = vperm.xlu1 %588, %v218_v34  }
 0x31b   :  { %589 = vset.pattern.permute.xlu1 %v622_v26  ;;  %v407_v26 = vsub.s32 6, %v242_v47 }
 0x31c   :  { %362 = vperm.xlu1 %589, %v216_v39  }
 0x31d   :  { %v408_v31 = vrot.slane %v220_v51, %v407_v26 }
 0x320   :  { %370 = vperm.xlu1 %589, %v218_v34  }
 0x324   :  { %591 = vset.pattern.permute.xlu1 %v623_v30  ;;  %v788_v30 = vrot.slane %v220_v51, %v435_v25 }
 0x325   :  { %418 = vperm.xlu1 %591, %v216_v39  }
 0x329   :  { %426 = vperm.xlu1 %591, %v218_v34  }
 0x32d   :  { %592 = vset.pattern.permute.xlu1 %v620_v45 }
 0x32e   :  { %482 = vperm.xlu1 %592, %v750_v10  }
 0x332   :  { %486 = vperm.xlu1 %592, %v448_v41  }
 0x33a   :  { %v229_v48 = vpop.permute.xlu1 %228  ;;  %v339_v16 = vpop.permute.xlu0 %338 }
 0x33b   :  { %v246_v55 = vmul.f32 %v775_v53, %v229_v48  ;;  %v354_v23 = vmul.f32 %v352_v19, %v339_v16 }
 0x33e   :  { %v239_v52 = vpop.permute.xlu1 %238 }
 0x33f   :  { %v248_v60 = vmul.f32 %v775_v53, %v239_v52  ;;  %v367_v22 = vpop.permute.xlu0 %366 }
 0x340   :  { %v382_v29 = vmul.f32 %v785_v24, %v367_v22 }
 0x343   :  { %v255_v45 = vpop.permute.xlu1 %254 }
 0x344   :  { %v270_v56 = vmul.f32 %v268_v54, %v255_v45  ;;  %v423_v32 = vpop.permute.xlu0 %422 }
 0x345   :  { %v438_v36 = vmul.f32 %v788_v30, %v423_v32 }
 0x346   :  { %v274_v58 = vadd.f32 %v270_v56, %v246_v55 }
 0x347   :  { %v263_v59 = vpop.permute.xlu1 %262 }
 0x348   :  { %v272_v61 = vmul.f32 %v268_v54, %v263_v59  ;;  %v431_v52 = vpop.permute.xlu0 %430 }
 0x34a   :  { %v276_v63 = vadd.f32 %v272_v61, %v248_v60 }
 0x34c   :  { %v283_v5 = vpop.permute.xlu1 %282 }
 0x34d   :  { %v298_v6 = vmul.f32 %v296_v62, %v283_v5  ;;  %v234_v55 = vpop.permute.xlu0 %233 }
 0x34f   :  { %v302_v7 = vadd.f32 %v298_v6, %v274_v58 }
 0x350   :  { %v291_v8 = vpop.permute.xlu1 %290 }
 0x351   :  { %v300_v10 = vmul.f32 %v296_v62, %v291_v8 }
 0x352   :  { %v315_v61 = vpop.permute.xlu0 %314 }
 0x353   :  { %v783_v12 = vadd.f32 %v300_v10, %v276_v63  ;;  %v247_v63 = vmul.f32 %v775_v53, %v234_v55  ;;  %v327_v20 = vmul.f32 %v324_v15, %v315_v61 }
 0x355   :  { %v311_v13 = vpop.permute.xlu1 %310 }
 0x356   :  { %v326_v17 = vmul.f32 %v324_v15, %v311_v13 }
 0x358   :  { %v330_v21 = vadd.f32 %v326_v17, %v302_v7  ;;  %v391_v17 = vpop.permute.xlu0 %390 }
 0x359   :  { %v319_v18 = vpop.permute.xlu1 %318 }
 0x35a   :  { %v358_v28 = vadd.f32 %v354_v23, %v330_v21  ;;  %v328_v26 = vmul.f32 %v324_v15, %v319_v18 }
 0x35c   :  { %v386_v34 = vadd.f32 %v382_v29, %v358_v28  ;;  %v399_v29 = vpop.permute.xlu0 %398 }
 0x35e   :  { %v347_v27 = vpop.permute.xlu1 %346 }
 0x35f   :  { %v356_v32 = vmul.f32 %v352_v19, %v347_v27 }
 0x363   :  { %v395_v33 = vpop.permute.xlu1 %394 }
 0x364   :  { %v410_v35 = vmul.f32 %v408_v31, %v395_v33 }
 0x366   :  { %v414_v37 = vadd.f32 %v410_v35, %v386_v34  ;;  %v470_v34 = vmul.f32 %v779_v4, %v676_v1 }
 0x368   :  { %v442_v38 = vadd.f32 %v438_v36, %v414_v37  ;;  %v375_v39 = vpop.permute.xlu1 %374 }
 0x36a   :  { %v490_v40 = vmul.f32 %v479_v46, %v442_v38  ;;  %v332_v38 = vadd.f32 %v328_v26, %v783_v12 }
 0x36c   :  { %v360_v18 = vadd.f32 %v356_v32, %v332_v38  ;;  %v494_v27 = vadd.f32 %v490_v40, %v470_v34 }
 0x36d   :  { %v403_v41 = vpop.permute.xlu1 %402 }
 0x372   :  { %v224_v44 = vpop.permute.xlu1 %223 }
 0x373   :  { %v245_v58 = vmul.f32 %v775_v53, %v224_v44  ;;  %v384_v44 = vmul.f32 %v785_v24, %v375_v39  ;;  %v498_v39 = vsel %vm32_vm0, %v494_v27, 0.0 }
 0x377   :  { %v251_v47 = vpop.permute.xlu1 %250 }
 0x378   :  { %v269_v56 = vmul.f32 %v268_v54, %v251_v47  ;;  %v411_v47 = vmul.f32 %v408_v31, %v399_v29 }
 0x37a   :  { %v273_v46 = vadd.f32 %v269_v56, %v245_v58 }
 0x37b   :  { %v259_v48 = vpop.permute.xlu1 %258 }
 0x37c   :  { %v271_v59 = vmul.f32 %v268_v54, %v259_v48 }
 0x37e   :  { %v275_v7 = vadd.f32 %v271_v59, %v247_v63 }
 0x380   :  { %v279_v49 = vpop.permute.xlu1 %278 }
 0x381   :  { %v297_v60 = vmul.f32 %v296_v62, %v279_v49  ;;  %v412_v49 = vmul.f32 %v408_v31, %v403_v41 }
 0x383   :  { %v301_v8 = vadd.f32 %v297_v60, %v273_v46 }
 0x384   :  { %v287_v50 = vpop.permute.xlu1 %286 }
 0x385   :  { %v299_v5 = vmul.f32 %v296_v62, %v287_v50  ;;  %v409_v62 = vmul.f32 %v408_v31, %v391_v17 }
 0x387   :  { %v303_v13 = vadd.f32 %v299_v5, %v275_v7 }
 0x389   :  { %v307_v45 = vpop.permute.xlu1 %306  ;;  %v331_v23 = vadd.f32 %v327_v20, %v303_v13 }
 0x38a   :  { %v325_v6 = vmul.f32 %v324_v15, %v307_v45  ;;  %v469_v15 = vmul.f32 %v766_v42, %v671_v0  ;;  %v388_v45 = vadd.f32 %v384_v44, %v360_v18  ;;  %v471_v0 = vmul.f32 %v781_v9, %v681_v2 }
 0x38b   :  { %v440_v42 = vmul.f32 %v788_v30, %v431_v52  ;;  %v511_v52 = vstv %s824_s6 }
 0x38c   :  { %v329_v14 = vadd.f32 %v325_v6, %v301_v8  ;;  %v416_v12 = vadd.f32 %v412_v49, %v388_v45 }
 0x38e   :  { %v335_v51 = vpop.permute.xlu1 %334  ;;  %v444_v41 = vadd.f32 %v440_v42, %v416_v12 }
 0x38f   :  { %v353_v10 = vmul.f32 %v352_v19, %v335_v51 }
 0x391   :  { %v357_v21 = vadd.f32 %v353_v10, %v329_v14 }
 0x392   :  { %v343_v57 = vpop.permute.xlu1 %342 }
 0x393   :  { %v355_v22 = vmul.f32 %v352_v19, %v343_v57  ;;  %v467_v57 = vpop.permute.xlu0 %466 }
 0x394   :  { %v472_v58 = vmul.f32 %v467_v57, %v686_v3 }
 0x395   :  { %v359_v28 = vadd.f32 %v355_v22, %v331_v23 }
 0x397   :  { %v363_v11 = vpop.permute.xlu1 %362 }
 0x398   :  { %v381_v16 = vmul.f32 %v785_v24, %v363_v11 }
 0x39a   :  { %v385_v25 = vadd.f32 %v381_v16, %v357_v21 }
 0x39b   :  { %v371_v54 = vpop.permute.xlu1 %370 }
 0x39c   :  { %v383_v53 = vmul.f32 %v785_v24, %v371_v54  ;;  %v413_v36 = vadd.f32 %v409_v62, %v385_v25 }
 0x39e   :  { %v387_v35 = vadd.f32 %v383_v53, %v359_v28 }
 0x3a0   :  { %v419_v33 = vpop.permute.xlu1 %418  ;;  %v415_v4 = vadd.f32 %v411_v47, %v387_v35 }
 0x3a1   :  { %v437_v37 = vmul.f32 %v788_v30, %v419_v33 }
 0x3a3   :  { %v441_v48 = vadd.f32 %v437_v37, %v413_v36 }
 0x3a4   :  { %v427_v19 = vpop.permute.xlu1 %426 }
 0x3a5   :  { %v489_v50 = vmul.f32 %v770_v43, %v441_v48  ;;  %v439_v1 = vmul.f32 %v788_v30, %v427_v19 }
 0x3a7   :  { %v493_v55 = vadd.f32 %v489_v50, %v469_v15  ;;  %v443_v51 = vadd.f32 %v439_v1, %v415_v4 }
 0x3a9   :  { %v483_v56 = vpop.permute.xlu1 %482  ;;  %v497_v24 = vsel %vm32_vm0, %v493_v55, 0.0 }
 0x3aa   :  { %v491_v31 = vmul.f32 %v483_v56, %v443_v51  ;;  %v499_v43 = vadd.f32 %v498_v39, %v497_v24 }
 0x3ac   :  { %v495_v40 = vadd.f32 %v491_v31, %v471_v0 }
 0x3ad   :  { %v487_v59 = vpop.permute.xlu1 %486 }
 0x3ae   :  { %v500_v60 = vsel %vm32_vm0, %v495_v40, 0.0  ;;  %v492_v61 = vmul.f32 %v487_v59, %v444_v41 }
 0x3af   :  { %v501_v46 = vadd.f32 %v500_v60, %v499_v43 }
 0x3b0   :  { %v496_v63 = vadd.f32 %v492_v61, %v472_v58 }
 0x3b2   :  { %v502_v5 = vsel %vm32_vm0, %v496_v63, 0.0 }
 0x3b3   :  { %v503_v6 = vadd.f32 %v502_v5, %v501_v46 }
 0x3b5   :  { %v504_v7 = vrot.slane %v503_v6, 4 }
 0x3b7   :  { %v505_v8 = vadd.f32 %v504_v7, %v503_v6 }
 0x3b9   :  { %v506_v2 = vrot.slane %v505_v8, 2 }
 0x3bb   :  { %v507_v9 = vadd.f32 %v506_v2, %v505_v8 }
 0x3bd   :  { %v508_v30 = vrot.slane %v507_v9, 1 }
 0x3bf   :  { %v509_v3 = vadd.f32 %v508_v30, %v507_v9 }
 0x3c1   :  { %v512_v10 = vadd.f32 %v511_v52, %v509_v3 }
 0x3c3   :  { %514 = vst.msk [vmem:[#allocation3] sm:$0x1] %vm513_vm1, %v512_v10 }
 0x3c4   :  { %608 = shalt.err (!%p605_p4)
}
 0x3c5   :  { %524 = dma.vmem_to_hbm [thread:$0]  %s522_s17, 16, %s825_s7, [#allocation4]  }
 0x3c6   :  { %617 = dma.done.wait [#allocation4], 16  }
 0x3c7   :  { %618 = vsyncadd [#allocation4], 4294967280 }
 0x3c8   :  { %528 = vsyncpa [#allocation4], 1 }

</bundles_post_ra>
